<compile_context>
chip_gen: v6e
topology: v6e:2x2x1
jax: 0.10.0
libtpu: 0.0.40
codegen_flags: <defaults>
</compile_context>

<pallas_src>
import jax
import jax.numpy as jnp
from jax.experimental import pallas as pl
from jax.experimental.pallas import tpu as pltpu


# ------------------------- fused KANSequential kernel -------------------------
def _build_fused_kernel(layer_meta, eps, matmul_dtype):
    """layer_meta: tuple of (n_order, has_bn, d_out) per KAN layer."""

    def kernel(*refs):
        # refs = (x_ref, [w2d_ref, bias_ref, (gamma_ref, beta_ref)?] per layer, out_ref)
        x_ref = refs[0]
        o_ref = refs[-1]
        idx = 1

        x = x_ref[...].astype(jnp.float32)
        for n_order, has_bn, _ in layer_meta:
            w_ref = refs[idx]
            b_ref = refs[idx + 1]
            idx += 2

            # --- KAN layer: tanh + Chebyshev T1..Tn, single K = n_order*d_in matmul ---
            t = jnp.tanh(x)
            polys = [t]                              # T1
            if n_order >= 2:
                t2 = 2.0 * t * t - 1.0               # closed-form T2 (no ones broadcast)
                polys.append(t2)
                prev, cur = t, t2
                for _ in range(n_order - 2):         # T_{k+1} = 2 t T_k - T_{k-1}
                    nxt = 2.0 * t * cur - prev
                    polys.append(nxt)
                    prev, cur = cur, nxt
            p = polys[0] if len(polys) == 1 else jnp.concatenate(polys, axis=1)
            y = jnp.dot(p.astype(matmul_dtype), w_ref[...],
                        preferred_element_type=jnp.float32)
            y = y + b_ref[...]                       # folded T0 contribution (f32)

            # --- BatchNorm1d (training-mode batch stats, centered variance) ---
            if has_bn:
                g_ref = refs[idx]
                be_ref = refs[idx + 1]
                idx += 2
                mean = jnp.mean(y, axis=0, keepdims=True)
                c = y - mean
                var = jnp.mean(c * c, axis=0, keepdims=True)
                scale = g_ref[...] * jax.lax.rsqrt(var + eps)
                y = c * scale + be_ref[...]

            x = y

        o_ref[...] = x.astype(o_ref.dtype)

    return kernel


# ------------------------- one-time parameter preparation ---------------------
def prepare_kan_sequential_params(params, matmul_dtype=jnp.bfloat16):
    """Hoisted, call-once preprocessing of the PyTorch-style parameter pytree.

    Returns (flat_inputs, layer_meta) where flat_inputs are ready-to-pass kernel
    operands: per layer [w2d (bf16), bias (f32), (gamma, beta (f32))?].
    """
    flat_inputs = []
    layer_meta = []
    for layer in params:
        w = jnp.asarray(layer["w"], jnp.float32)     # (n_order+1, d_in, d_out)
        n1, d_in, d_out = w.shape
        n_order = n1 - 1

        # 2D lane-major weight slab for a single MXU push (rows n-major, i-minor,
        # matching concat([T1, ..., Tn], axis=1)); bf16 operands, f32 accumulate.
        w2d = w[1:].reshape((n_order * d_in, d_out)).astype(matmul_dtype)
        # T0 == 1 contribution is a bias independent of x.
        bias = jnp.sum(w[0], axis=0).reshape(1, d_out).astype(jnp.float32)
        flat_inputs += [w2d, bias]

        has_bn = "gamma" in layer
        if has_bn:
            flat_inputs += [jnp.asarray(layer["gamma"], jnp.float32).reshape(1, d_out),
                            jnp.asarray(layer["beta"], jnp.float32).reshape(1, d_out)]
        layer_meta.append((n_order, has_bn, d_out))

    return tuple(flat_inputs), tuple(layer_meta)


# --------------------------------- forward ------------------------------------
def kan_sequential_forward(flat_inputs, layer_meta, x, eps=1e-5,
                           matmul_dtype=jnp.bfloat16):
    """Fused forward: one pallas_call (no grid) for the whole layer chain."""
    B = x.shape[0]
    d_final = layer_meta[-1][2]

    inputs = (x,) + tuple(flat_inputs)
    vmem_spec = pl.BlockSpec(memory_space=pltpu.MemorySpace.VMEM)

    # Size the VMEM request from the actual buffer footprint (+ headroom), never a
    # hard-coded 64 MiB (== entire per-TC VMEM on v7x).
    buf_bytes = sum(int(a.size) * a.dtype.itemsize for a in inputs)
    buf_bytes += B * d_final * 4
    vmem_limit = min(max(2 * buf_bytes + (4 << 20), 4 << 20), 48 << 20)

    kernel = _build_fused_kernel(layer_meta, eps, matmul_dtype)

    return pl.pallas_call(
        kernel,
        out_shape=jax.ShapeDtypeStruct((B, d_final), x.dtype),
        in_specs=[vmem_spec] * len(inputs),
        out_specs=vmem_spec,
        compiler_params=pltpu.CompilerParams(vmem_limit_bytes=vmem_limit),
    )(*inputs)


# ------------------------------ parameter init --------------------------------
def init_kan_sequential_params(key, channels, n_order=3, std=0.02):
    """Deterministic parameter init mirroring the PyTorch __init__."""
    params = []
    for i in range(1, len(channels)):
        key, sub = jax.random.split(key)
        w = jax.random.normal(sub, (n_order + 1, channels[i - 1], channels[i]),
                              dtype=jnp.float32) * std
        layer = {"w": w}
        if i < len(channels) - 1:
            # BatchNorm1d default init: weight=1, bias=0
            layer["gamma"] = jnp.ones((channels[i],), jnp.float32)
            layer["beta"] = jnp.zeros((channels[i],), jnp.float32)
        params.append(layer)
    return params


# ---------------------------- pure-JAX reference -------------------------------
def kan_sequential_reference(params, x, eps=1e-5):
    y = x.astype(jnp.float32)
    for layer in params:
        w = layer["w"]
        t = jnp.tanh(y)
        polys = jnp.stack([jnp.ones_like(t), t, 2 * t * t - 1.0,
                           4 * t * t * t - 3.0 * t], axis=-1)   # (B, d_in, 4)
        y = jnp.einsum("bin,nid->bd", polys, w)
        if "gamma" in layer:
            mean = jnp.mean(y, axis=0)
            var = jnp.mean((y - mean) ** 2, axis=0)
            y = (y - mean) * (layer["gamma"] * jax.lax.rsqrt(var + eps)) + layer["beta"]
    return y


if __name__ == "__main__":
    key = jax.random.PRNGKey(0)
    channels = (4, 32, 16)   # KAN(4->32) -> BN(32) -> KAN(32->16)
    B = 8                    # f32 sublane-aligned batch

    pkey, xkey = jax.random.split(key)
    params = init_kan_sequential_params(pkey, channels)
    x = jax.random.normal(xkey, (B, channels[0]), dtype=jnp.float32)

    # One-time parameter prep (hoisted out of the per-call path).
    flat_inputs, layer_meta = prepare_kan_sequential_params(params)

    out = kan_sequential_forward(flat_inputs, layer_meta, x)
    out = jax.block_until_ready(out)

    assert out.shape == (B, channels[-1]), out.shape
    assert bool(jnp.all(jnp.isfinite(out)))

    # Parity check vs. pure-JAX reference (loose tol: bf16 matmul operands).
    ref = kan_sequential_reference(params, x)
    assert bool(jnp.max(jnp.abs(out - ref)) < 5e-2), float(jnp.max(jnp.abs(out - ref)))

    print("KERNEL_OK")
</pallas_src>

<mosaic_0001>
module attributes {stable_mosaic.version = 11 : i64} {
  func.func @kernel(%arg0: memref<8x4xf32, #tpu.memory_space<vmem>>, %arg1: memref<12x32xbf16, #tpu.memory_space<vmem>>, %arg2: memref<1x32xf32, #tpu.memory_space<vmem>>, %arg3: memref<1x32xf32, #tpu.memory_space<vmem>>, %arg4: memref<1x32xf32, #tpu.memory_space<vmem>>, %arg5: memref<96x16xbf16, #tpu.memory_space<vmem>>, %arg6: memref<1x16xf32, #tpu.memory_space<vmem>>, %arg7: memref<8x16xf32, #tpu.memory_space<vmem>>) attributes {dimension_semantics = [], scalar_prefetch = 0 : i64, scratch_operands = 0 : i64, tpu.core_type = #tpu.core_type<tc>} {
    %c0 = arith.constant 0 : index
    %c0_0 = arith.constant 0 : index
    %0 = vector.load %arg0[%c0, %c0_0] : memref<8x4xf32, #tpu.memory_space<vmem>>, vector<8x4xf32>
    %1 = math.tanh %0 : vector<8x4xf32>
    %cst = arith.constant 2.000000e+00 : f32
    %2 = vector.broadcast %cst : f32 to vector<8x4xf32>
    %3 = arith.mulf %2, %1 : vector<8x4xf32>
    %4 = arith.mulf %3, %1 : vector<8x4xf32>
    %cst_1 = arith.constant 1.000000e+00 : f32
    %5 = vector.broadcast %cst_1 : f32 to vector<8x4xf32>
    %6 = arith.subf %4, %5 : vector<8x4xf32>
    %cst_2 = arith.constant 2.000000e+00 : f32
    %7 = vector.broadcast %cst_2 : f32 to vector<8x4xf32>
    %8 = arith.mulf %7, %1 : vector<8x4xf32>
    %9 = arith.mulf %8, %6 : vector<8x4xf32>
    %10 = arith.subf %9, %1 : vector<8x4xf32>
    %11 = tpu.concatenate %1, %6, %10 in 1 : vector<8x4xf32>, vector<8x4xf32>, vector<8x4xf32> -> vector<8x12xf32>
    %12 = arith.truncf %11 : vector<8x12xf32> to vector<8x12xbf16>
    %c0_3 = arith.constant 0 : index
    %c0_4 = arith.constant 0 : index
    %13 = vector.load %arg1[%c0_3, %c0_4] : memref<12x32xbf16, #tpu.memory_space<vmem>>, vector<12x32xbf16>
    %cst_5 = arith.constant dense<0.000000e+00> : vector<8x32xf32>
    %14 = tpu.matmul %12, %13, %cst_5 {dimension_numbers = #tpu.dot_dimension_numbers<[1], [0], [0], [1], [0, 0, 1, 1], [], []>} : vector<8x12xbf16>, vector<12x32xbf16>, vector<8x32xf32> -> vector<8x32xf32>
    %c0_6 = arith.constant 0 : index
    %c0_7 = arith.constant 0 : index
    %15 = vector.load %arg2[%c0_6, %c0_7] : memref<1x32xf32, #tpu.memory_space<vmem>>, vector<1x32xf32>
    %16 = vector.broadcast %15 : vector<1x32xf32> to vector<8x32xf32>
    %17 = arith.addf %14, %16 : vector<8x32xf32>
    %cst_8 = arith.constant dense<0.000000e+00> : vector<32xf32>
    %18 = vector.multi_reduction <add>, %17, %cst_8 [0] : vector<8x32xf32> to vector<32xf32>
    %19 = vector.shape_cast %18 : vector<32xf32> to vector<1x32xf32>
    %cst_9 = arith.constant 8.000000e+00 : f32
    %20 = vector.broadcast %cst_9 : f32 to vector<1x32xf32>
    %21 = arith.divf %19, %20 : vector<1x32xf32>
    %22 = vector.broadcast %21 : vector<1x32xf32> to vector<8x32xf32>
    %23 = arith.subf %17, %22 : vector<8x32xf32>
    %24 = arith.mulf %23, %23 : vector<8x32xf32>
    %cst_10 = arith.constant dense<0.000000e+00> : vector<32xf32>
    %25 = vector.multi_reduction <add>, %24, %cst_10 [0] : vector<8x32xf32> to vector<32xf32>
    %26 = vector.shape_cast %25 : vector<32xf32> to vector<1x32xf32>
    %cst_11 = arith.constant 8.000000e+00 : f32
    %27 = vector.broadcast %cst_11 : f32 to vector<1x32xf32>
    %28 = arith.divf %26, %27 : vector<1x32xf32>
    %c0_12 = arith.constant 0 : index
    %c0_13 = arith.constant 0 : index
    %29 = vector.load %arg3[%c0_12, %c0_13] : memref<1x32xf32, #tpu.memory_space<vmem>>, vector<1x32xf32>
    %cst_14 = arith.constant 9.99999974E-6 : f32
    %30 = vector.broadcast %cst_14 : f32 to vector<1x32xf32>
    %31 = arith.addf %28, %30 : vector<1x32xf32>
    %32 = math.rsqrt %31 : vector<1x32xf32>
    %33 = arith.mulf %29, %32 : vector<1x32xf32>
    %34 = vector.broadcast %33 : vector<1x32xf32> to vector<8x32xf32>
    %35 = arith.mulf %23, %34 : vector<8x32xf32>
    %c0_15 = arith.constant 0 : index
    %c0_16 = arith.constant 0 : index
    %36 = vector.load %arg4[%c0_15, %c0_16] : memref<1x32xf32, #tpu.memory_space<vmem>>, vector<1x32xf32>
    %37 = vector.broadcast %36 : vector<1x32xf32> to vector<8x32xf32>
    %38 = arith.addf %35, %37 : vector<8x32xf32>
    %39 = math.tanh %38 : vector<8x32xf32>
    %cst_17 = arith.constant 2.000000e+00 : f32
    %40 = vector.broadcast %cst_17 : f32 to vector<8x32xf32>
    %41 = arith.mulf %40, %39 : vector<8x32xf32>
    %42 = arith.mulf %41, %39 : vector<8x32xf32>
    %cst_18 = arith.constant 1.000000e+00 : f32
    %43 = vector.broadcast %cst_18 : f32 to vector<8x32xf32>
    %44 = arith.subf %42, %43 : vector<8x32xf32>
    %cst_19 = arith.constant 2.000000e+00 : f32
    %45 = vector.broadcast %cst_19 : f32 to vector<8x32xf32>
    %46 = arith.mulf %45, %39 : vector<8x32xf32>
    %47 = arith.mulf %46, %44 : vector<8x32xf32>
    %48 = arith.subf %47, %39 : vector<8x32xf32>
    %49 = tpu.concatenate %39, %44, %48 in 1 : vector<8x32xf32>, vector<8x32xf32>, vector<8x32xf32> -> vector<8x96xf32>
    %50 = arith.truncf %49 : vector<8x96xf32> to vector<8x96xbf16>
    %c0_20 = arith.constant 0 : index
    %c0_21 = arith.constant 0 : index
    %51 = vector.load %arg5[%c0_20, %c0_21] : memref<96x16xbf16, #tpu.memory_space<vmem>>, vector<96x16xbf16>
    %cst_22 = arith.constant dense<0.000000e+00> : vector<8x16xf32>
    %52 = tpu.matmul %50, %51, %cst_22 {dimension_numbers = #tpu.dot_dimension_numbers<[1], [0], [0], [1], [0, 0, 1, 1], [], []>} : vector<8x96xbf16>, vector<96x16xbf16>, vector<8x16xf32> -> vector<8x16xf32>
    %c0_23 = arith.constant 0 : index
    %c0_24 = arith.constant 0 : index
    %53 = vector.load %arg6[%c0_23, %c0_24] : memref<1x16xf32, #tpu.memory_space<vmem>>, vector<1x16xf32>
    %54 = vector.broadcast %53 : vector<1x16xf32> to vector<8x16xf32>
    %55 = arith.addf %52, %54 : vector<8x16xf32>
    %c0_25 = arith.constant 0 : index
    %c0_26 = arith.constant 0 : index
    %56 = vector.load %arg7[%c0_25, %c0_26] : memref<8x16xf32, #tpu.memory_space<vmem>>, vector<8x16xf32>
    tpu.vector_store %arg7[%c0_25, %c0_26], %55 {strides = array<i32>} : memref<8x16xf32, #tpu.memory_space<vmem>>, vector<8x16xf32>,
    return
  }
}

</mosaic_0001>

<bundles_post_ra>
// kernel: tpu_custom_call.1
= control target key start
LH: loop header
LB: loop body
LE: loop exit
PB: predicated region body
PF: predicated region fallthrough
CT: control target
= control target key end

     0   :  { %s467_s0 = inlined_call_operand.vmem [shape: f32[8,4], index: 0, kind: input, shape index: {}]   ;;  %s468_s1 = inlined_call_operand.vmem [shape: bf16[12,32], index: 1, kind: input, shape index: {}]   ;;  %s469_s2 = inlined_call_operand.vmem [shape: f32[1,32], index: 2, kind: input, shape index: {}]   ;;  %s470_s3 = inlined_call_operand.vmem [shape: f32[1,32], index: 3, kind: input, shape index: {}]   ;;  %s471_s4 = inlined_call_operand.vmem [shape: f32[1,32], index: 4, kind: input, shape index: {}]   ;;  %s472_s5 = inlined_call_operand.vmem [shape: bf16[96,16], index: 5, kind: input, shape index: {}]   ;;  %s473_s6 = inlined_call_operand.vmem [shape: f32[1,16], index: 6, kind: input, shape index: {}]   ;;  %s474_s7 = inlined_call_operand.hbm [shape: f32[8,16], index: 7, kind: output, shape index: {}]  }
   0x1   :  { %v28_v0 = vld [vmem:[%s467_s0] sm:$0xff] }
   0x2   :  { %341 = vtanh.f32 %v28_v0 }
   0x3   :  { %12 = vsyncpa [#allocation3], 0  ;;  %v369_v1 = vmov 0.0   ;;  %v334_v2 = vld [vmem:[%s468_s1] sm:$0x3f]   ;;  %vm66_vm0 = vcmask 1045504   ;;  %v135_v44 = vlaneseq }
   0x4   :  { %305 = vmatprep.subr.bf16.mxu0 %v369_v1  ;;  %311 = vmatprep.subr.bf16.mxu1 %v369_v1  ;;  %v68_v3 = vsel %vm66_vm0, %v334_v2, 0  ;;  %vm370_vm1 = vmmov 0   ;;  %s371_s0 = smov 4   ;;  %s372_s28 = smov 8   ;;  %vm43_vm2 = vcmask 31744   ;;  %vm45_vm3 = vcmask 64512  }
   0x5   :  { %306 = vmatpush3.bf16.msra.mxu0 %v68_v3  ;;  %307 = vmatprep.mubr.msk.bf16.mxu0 %vm370_vm1, %v369_v1  ;;  %vm62_vm4 = vcmask 97280   ;;  %v335_v15 = vld [vmem:[%s472_s5 + $0x28] sm:$0xff]   ;;  %v336_v16 = vld [vmem:[%s472_s5 + $0x20] sm:$0xff]   ;;  %v337_v17 = vld [vmem:[%s472_s5 + $0x18] sm:$0xff]   ;;  %vm110_vm5 = vcmask 261120   ;;  %v136_v45 = vshrl.u32 %v135_v44, 7 }
   0x6   :  { %323 = vmatprep.mubr.msk.bf16.mxu1 %vm370_vm1, %v369_v1  ;;  %312 = vmatpush3.bf16.msra.mxu1 %v335_v15  ;;  %v338_v18 = vld [vmem:[%s472_s5 + $0x10] sm:$0xff]   ;;  %v283_v19 = vld [vmem:[%s469_s2] ss:$0 sm:$0xff]  ;;  %v339_v54 = vld [vmem:[%s472_s5 + $0x8] sm:$0xff]   ;;  %s374_s21 = smov 64   ;;  %vm164_vm6 = vcmask 523264  }
   0x7   :  { %313 = vmatprep.subr.bf16.mxu1 %v369_v1  ;;  %v130_v46 = vld [vmem:[%s470_s3] sm:$0x1]  ;;  %v137_v47 = vsub.s32 0, %v136_v45  ;;  %vm222_vm7 = vcmask 785408   ;;  %s375_s23 = smov [#allocation2]   ;;  %vm266_vm8 = vcmask 130048  }
   0x8   :  { %v286_v51 = vld [vmem:[%s471_s4] ss:$0 sm:$0xff]  ;;  %s373_s4 = smov 32   ;;  %s274_s24 = sshll.u32 %s375_s23, 4  ;;  %s275_s24 = int_to_ptr.vmem [resolvable:$true] %s274_s24 }
   0x9   :  { %v340_v55 = vld [vmem:[%s472_s5] sm:$0xff]   ;;  %s347_s25 = scalar_lea.vmem %s275_s24, 128  ;;  %p352_p1 = scmp.lt.s32.totalorder %s275_s24, %s275_s24 }
   0xa   :  { %314 = vmatpush3.bf16.msra.mxu1 %v336_v16  ;;  %v288_v3 = vld [vmem:[%s473_s6] ss:$0 sm:$0xff]  ;;  %p348_p0 = scmp.ne.s32.totalorder %s275_s24, %s347_s25  ;;  %p353_p2 = scmp.lt.s32.totalorder %s347_s25, %s347_s25 }
   0xb   :  { %315 = vmatprep.subr.bf16.mxu1 %v369_v1 }
   0xc   :  { %p354_p3 = por %p353_p2, %p352_p1 }
   0xe   :  { %316 = vmatpush3.bf16.msra.mxu1 %v337_v17  ;;  %p355_p4 = pnand %p354_p3, %p348_p0 }
   0xf   :  { %v342_v4 = vpop.eup %341  ;;  %317 = vmatprep.subr.bf16.mxu1 %v369_v1 }
  0x10   :  { %v30_v5 = vmul.f32 2.0, %v342_v4 }
  0x12   :  { %v31_v6 = vmul.f32 %v342_v4, %v30_v5  ;;  %318 = vmatpush3.bf16.msra.mxu1 %v338_v18 }
  0x13   :  { %319 = vmatprep.subr.bf16.mxu1 %v369_v1 }
  0x14   :  { %v282_v7 = vadd.f32 -1.0, %v31_v6 }
  0x16   :  { %36 = vrot.lane.b32.xlu0 %v282_v7, %s371_s0  ;;  %v33_v8 = vmul.f32 %v282_v7, %v30_v5  ;;  %320 = vmatpush3.bf16.msra.mxu1 %v339_v54 }
  0x17   :  { %321 = vmatprep.subr.bf16.mxu1 %v369_v1 }
  0x18   :  { %v34_v9 = vsub.f32 %v33_v8, %v342_v4 }
  0x1a   :  { %40 = vrot.lane.b32.xlu0 %v34_v9, %s372_s28  ;;  %322 = vmatpush3.bf16.msra.mxu1 %v340_v55 }
  0x88   :  { %v37_v10 = vpop.permute.xlu0 %36 }
  0x89   :  { %v44_v11 = vsel %vm43_vm2, %v342_v4, %v37_v10 }
  0x8c   :  { %v41_v12 = vpop.permute.xlu0 %40 }
  0x8d   :  { %v46_v13 = vsel %vm45_vm3, %v44_v11, %v41_v12 }
  0x8e   :  { %v47_v14 = vpack.c.bf16 %v46_v13, %v46_v13 }
  0x90   :  { %308 = vmatmul.mubr.msk.bf16.vlgmr.msra.gmra.mxu0 %vm62_vm4, %v47_v14 }
 0x150   :  { %v104_v20 = vpop.f32.mrf.mxu0 }
 0x151   :  { %v105_v21 = vadd.f32 %v283_v19, %v104_v20 }
 0x152   :  { %v309_v22 = vpop.f32.mrf.mxu0 }
 0x153   :  { %v111_v23 = vsel %vm110_vm5, %v105_v21, 0.0 }
 0x154   :  { %v112_v24 = vrot.slane %v111_v23, 4  ;;  %v107_v25 = vpop.f32.mrf.mxu0 }
 0x156   :  { %v113_v26 = vadd.f32 %v112_v24, %v111_v23  ;;  %v310_v27 = vpop.f32.mrf.mxu0 }
 0x158   :  { %v114_v28 = vrot.slane %v113_v26, 2 }
 0x15a   :  { %v115_v29 = vadd.f32 %v114_v28, %v113_v26 }
 0x15c   :  { %v116_v30 = vrot.slane %v115_v29, 1 }
 0x15e   :  { %v117_v31 = vadd.f32 %v116_v30, %v115_v29 }
 0x160   :  { %v119_v32 = vmul.f32 0.125, %v117_v31 }
 0x162   :  { %v120_v33 = vsub.f32 %v105_v21, %v119_v32 }
 0x164   :  { %v121_v34 = vmul.f32 %v120_v33, %v120_v33 }
 0x166   :  { %v122_v35 = vsel %vm110_vm5, %v121_v34, 0.0 }
 0x167   :  { %v123_v36 = vrot.slane %v122_v35, 4 }
 0x169   :  { %v124_v37 = vadd.f32 %v123_v36, %v122_v35 }
 0x16b   :  { %v125_v38 = vrot.slane %v124_v37, 2 }
 0x16d   :  { %v126_v39 = vadd.f32 %v125_v38, %v124_v37 }
 0x16f   :  { %v127_v40 = vrot.slane %v126_v39, 1 }
 0x171   :  { %v128_v41 = vadd.f32 %v127_v40, %v126_v39 }
 0x173   :  { %v129_v42 = vmul.f32 0.125, %v128_v41 }
 0x175   :  { %v131_v43 = vadd.f32 1e-05, %v129_v42 }
 0x177   :  { %343 = vrsqrt.f32 %v131_v43 }
 0x184   :  { %v344_v48 = vpop.eup %343 }
 0x185   :  { %v133_v49 = vmul.f32 %v344_v48, %v130_v46 }
 0x187   :  { %v138_v50 = vrot.slane %v133_v49, %v137_v47 }
 0x189   :  { %v140_v52 = vmul.f32 %v138_v50, %v120_v33 }
 0x18b   :  { %v148_v53 = vadd.f32 %v286_v51, %v140_v52 }
 0x18d   :  { %345 = vtanh.f32 %v148_v53 }
 0x19a   :  { %v346_v56 = vpop.eup %345 }
 0x19b   :  { %v150_v57 = vmul.f32 2.0, %v346_v56 }
 0x19d   :  { %v151_v58 = vmul.f32 %v346_v56, %v150_v57 }
 0x19f   :  { %v287_v59 = vadd.f32 -1.0, %v151_v58 }
 0x1a1   :  { %156 = vrot.lane.b32.xlu1 %v287_v59, %s373_s4  ;;  %v153_v60 = vmul.f32 %v287_v59, %v150_v57 }
 0x1a3   :  { %v154_v61 = vsub.f32 %v153_v60, %v346_v56 }
 0x1a5   :  { %160 = vrot.lane.b32.xlu1 %v154_v61, %s374_s21 }
 0x213   :  { %v157_v62 = vpop.permute.xlu1 %156 }
 0x214   :  { %v163_v63 = vsel %vm110_vm5, %v346_v56, %v157_v62 }
 0x217   :  { %v161_v0 = vpop.permute.xlu1 %160 }
 0x218   :  { %v165_v1 = vsel %vm164_vm6, %v163_v63, %v161_v0 }
 0x219   :  { %v166_v2 = vpack.c.bf16 %v165_v1, %v165_v1 }
 0x21b   :  { %324 = vmatmul.mubr.msk.bf16.vlgmr.msra.gmra.mxu1 %vm222_vm7, %v166_v2 }
 0x2db   :  { %v260_v4 = vpop.f32.mrf.mxu1 }
 0x2dc   :  { %v261_v5 = vadd.f32 %v288_v3, %v260_v4 }
 0x2dd   :  { %v325_v6 = vpop.f32.mrf.mxu1 }
 0x2de   :  { %267 = vst.msk [vmem:[#allocation2] sm:$0xff] %vm266_vm8, %v261_v5 }
 0x2df   :  { %v263_v7 = vpop.f32.mrf.mxu1 }
 0x2e0   :  { %358 = shalt.err (!%p355_p4)
}
 0x2e1   :  { %277 = dma.vmem_to_hbm [thread:$0]  %s275_s24, 128, %s474_s7, [#allocation3]   ;;  %v326_v8 = vpop.f32.mrf.mxu1 }
 0x2e2   :  { %367 = dma.done.wait [#allocation3], 128  }
 0x2e3   :  { %368 = vsyncadd [#allocation3], 4294967168 }
 0x2e4   :  { %281 = vsyncpa [#allocation3], 1 }

</bundles_post_ra>
